<compile_context>
chip_gen: v7x
topology: tpu7x:2x2x1
jax: 0.10.0
libtpu: 0.0.40
codegen_flags: <defaults>
</compile_context>

<pallas_src>
import functools

import jax
import jax.numpy as jnp
from jax.experimental import pallas as pl
from jax.experimental.pallas import tpu as pltpu


def _concentration_kernel(x_ref, w_ref, shift_ref, pmat_ref, o_ref):
    # x_ref:     (B, Cin, HW)   NCHW activations, spatial dims flattened (lane-dense)
    # w_ref:     (Cout, Cin)    1x1 conv weight with BN scale folded in
    # shift_ref: (Cout, 1)      folded BN shift (includes conv bias), applied post-pool
    # pmat_ref:  (HW, Np)       average-pool matrix (each column sums to 1)
    # o_ref:     (B, Cout, Np)
    w = w_ref[...]
    pmat = pmat_ref[...]
    shift = shift_ref[...]
    B = x_ref.shape[0]
    for b in range(B):  # static unroll, B is tiny and known at trace time
        y = jnp.dot(w, x_ref[b], preferred_element_type=jnp.float32)   # (Cout, HW)
        pooled = jnp.dot(y, pmat, preferred_element_type=jnp.float32)  # (Cout, Np)
        o_ref[b] = (pooled + shift).astype(o_ref.dtype)


@functools.partial(jax.jit, static_argnames=("pool_size",))
def concentration_pipeline(x_nchw, conv_w, conv_b, bn_gamma, bn_beta,
                           bn_mean, bn_var, *, pool_size, eps=1e-5):
    """x_nchw: (B, Cin, H, W) float32 -> (B, Cout * (H//P) * (W//P))."""
    B, Cin, H, W = x_nchw.shape
    Cout = conv_w.shape[0]
    P = pool_size
    # shift-after-pool folding requires exact (remainder-free) pooling windows
    assert H % P == 0 and W % P == 0
    Hp, Wp = H // P, W // P
    HW, Np = H * W, Hp * Wp

    # ---- free reshape: NCHW -> (B, Cin, HW); no HBM transpose ----
    x = x_nchw.reshape(B, Cin, HW)

    # ---- fold conv bias + inference-mode BatchNorm ----
    inv_std = 1.0 / jnp.sqrt(bn_var + eps)
    scale = bn_gamma * inv_std                                    # (Cout,)
    w_folded = conv_w.reshape(Cout, Cin) * scale[:, None]         # (Cout, Cin)
    shift = (bn_beta + (conv_b - bn_mean) * scale).reshape(Cout, 1)

    # ---- constant averaging-pool matrix, transposed: (HW, Np) ----
    h = jnp.arange(HW) // W
    w = jnp.arange(HW) % W
    cell = (h // P) * Wp + (w // P)                               # pool cell per pixel
    pmat_t = (cell[:, None] == jnp.arange(Np)[None, :]).astype(jnp.float32) / float(P * P)

    flops = 2 * B * Cout * HW * (Cin + Np)
    bytes_accessed = 4 * (B * Cin * HW + Cout * Cin + Cout + HW * Np + B * Cout * Np)

    out = pl.pallas_call(
        _concentration_kernel,
        out_shape=jax.ShapeDtypeStruct((B, Cout, Np), jnp.float32),
        grid_spec=pltpu.PrefetchScalarGridSpec(
            num_scalar_prefetch=0,
            grid=(1,),                                   # collapsed grid: one step
            in_specs=[
                pl.BlockSpec((B, Cin, HW), lambda i: (0, 0, 0)),
                pl.BlockSpec((Cout, Cin), lambda i: (0, 0)),
                pl.BlockSpec((Cout, 1), lambda i: (0, 0)),
                pl.BlockSpec((HW, Np), lambda i: (0, 0)),
            ],
            out_specs=pl.BlockSpec((B, Cout, Np), lambda i: (0, 0, 0)),
        ),
        compiler_params=pltpu.CompilerParams(
            dimension_semantics=("arbitrary",)),
        cost_estimate=pl.CostEstimate(flops=flops, transcendentals=0,
                                      bytes_accessed=bytes_accessed),
    )(x, w_folded, shift, pmat_t)

    # (B, Cout, Np) -> (B, Cout*Np): contiguous row-major reshape (free) and already
    # in the PyTorch Flatten((Cout, Hp, Wp)) channel-major order.
    return out.reshape(B, Cout * Np)


def _reference(x_nchw, conv_w, conv_b, bn_gamma, bn_beta, bn_mean, bn_var,
               pool_size, eps=1e-5):
    # pure-JAX reference mirroring the PyTorch forward (eval mode)
    B, Cin, H, W = x_nchw.shape
    Cout = conv_w.shape[0]
    y = jnp.einsum('bchw,oc->bohw', x_nchw, conv_w.reshape(Cout, Cin)) \
        + conv_b[None, :, None, None]
    y = (y - bn_mean[None, :, None, None]) / jnp.sqrt(bn_var + eps)[None, :, None, None]
    y = y * bn_gamma[None, :, None, None] + bn_beta[None, :, None, None]
    P = pool_size
    Hp, Wp = H // P, W // P
    y = y.reshape(B, Cout, Hp, P, Wp, P).mean(axis=(3, 5))
    return y.reshape(B, -1)


if __name__ == "__main__":
    # ConcentrationPipeline(in_filters=16, p_comp=4, pool_size=4)
    B, Cin, H, W = 2, 16, 16, 16
    p_comp, pool_size = 4, 4
    Cout = Cin // p_comp

    key = jax.random.PRNGKey(0)
    kx, kw, kb, kg, kbe, km, kv = jax.random.split(key, 7)
    x = jax.random.normal(kx, (B, Cin, H, W), dtype=jnp.float32)
    conv_w = jax.random.normal(kw, (Cout, Cin, 1, 1), dtype=jnp.float32) * 0.1
    conv_b = jax.random.normal(kb, (Cout,), dtype=jnp.float32) * 0.1
    bn_gamma = 1.0 + 0.1 * jax.random.normal(kg, (Cout,), dtype=jnp.float32)
    bn_beta = 0.1 * jax.random.normal(kbe, (Cout,), dtype=jnp.float32)
    bn_mean = 0.1 * jax.random.normal(km, (Cout,), dtype=jnp.float32)
    bn_var = jnp.abs(1.0 + 0.1 * jax.random.normal(kv, (Cout,), dtype=jnp.float32))

    out = concentration_pipeline(x, conv_w, conv_b, bn_gamma, bn_beta,
                                 bn_mean, bn_var, pool_size=pool_size)
    out = jax.block_until_ready(out)

    ref = _reference(x, conv_w, conv_b, bn_gamma, bn_beta, bn_mean, bn_var,
                     pool_size)
    assert out.shape == (B, Cout * (H // pool_size) * (W // pool_size))
    assert jnp.allclose(out, ref, atol=1e-4, rtol=1e-4)
    print("KERNEL_OK")
</pallas_src>

<mosaic_0001>
module attributes {stable_mosaic.version = 11 : i64} {
  func.func @_concentration_kernel(%arg0: i32, %arg1: memref<2x16x256xf32, #tpu.memory_space<vmem>>, %arg2: memref<4x16xf32, #tpu.memory_space<vmem>>, %arg3: memref<4x1xf32, #tpu.memory_space<vmem>>, %arg4: memref<256x16xf32, #tpu.memory_space<vmem>>, %arg5: memref<2x4x16xf32, #tpu.memory_space<vmem>>) attributes {dimension_semantics = [#tpu.dimension_semantics<arbitrary>], iteration_bounds = array<i64: 1>, scalar_prefetch = 0 : i64, scratch_operands = 0 : i64, tpu.core_type = #tpu.core_type<tc>, window_params = [{pipeline_mode = #tpu.pipeline_mode<synchronous>, transform_indices = @transform_0, window_bounds = array<i64: 2, 16, 256>}, {pipeline_mode = #tpu.pipeline_mode<synchronous>, transform_indices = @transform_1, window_bounds = array<i64: 4, 16>}, {pipeline_mode = #tpu.pipeline_mode<synchronous>, transform_indices = @transform_2, window_bounds = array<i64: 4, 1>}, {pipeline_mode = #tpu.pipeline_mode<synchronous>, transform_indices = @transform_3, window_bounds = array<i64: 256, 16>}, {pipeline_mode = #tpu.pipeline_mode<synchronous>, transform_indices = @transform_4, window_bounds = array<i64: 2, 4, 16>}]} {
    %c0 = arith.constant 0 : index
    %c0_0 = arith.constant 0 : index
    %0 = vector.load %arg2[%c0, %c0_0] : memref<4x16xf32, #tpu.memory_space<vmem>>, vector<4x16xf32>
    %c0_1 = arith.constant 0 : index
    %c0_2 = arith.constant 0 : index
    %1 = vector.load %arg4[%c0_1, %c0_2] : memref<256x16xf32, #tpu.memory_space<vmem>>, vector<256x16xf32>
    %c0_3 = arith.constant 0 : index
    %c0_4 = arith.constant 0 : index
    %2 = vector.load %arg3[%c0_3, %c0_4] : memref<4x1xf32, #tpu.memory_space<vmem>>, vector<4x1xf32>
    %c0_5 = arith.constant 0 : index
    %c0_6 = arith.constant 0 : index
    %c0_7 = arith.constant 0 : index
    %3 = vector.load %arg1[%c0_5, %c0_6, %c0_7] : memref<2x16x256xf32, #tpu.memory_space<vmem>>, vector<1x16x256xf32>
    %4 = vector.shape_cast %3 : vector<1x16x256xf32> to vector<16x256xf32>
    %cst = arith.constant dense<0.000000e+00> : vector<4x256xf32>
    %5 = tpu.matmul %0, %4, %cst {dimension_numbers = #tpu.dot_dimension_numbers<[1], [0], [0], [1], [0, 0, 1, 1], [], []>} : vector<4x16xf32>, vector<16x256xf32>, vector<4x256xf32> -> vector<4x256xf32>
    %cst_8 = arith.constant dense<0.000000e+00> : vector<4x16xf32>
    %6 = tpu.matmul %5, %1, %cst_8 {dimension_numbers = #tpu.dot_dimension_numbers<[1], [0], [0], [1], [0, 0, 1, 1], [], []>} : vector<4x256xf32>, vector<256x16xf32>, vector<4x16xf32> -> vector<4x16xf32>
    %7 = vector.broadcast %2 : vector<4x1xf32> to vector<4x16xf32>
    %8 = arith.addf %6, %7 : vector<4x16xf32>
    %c0_9 = arith.constant 0 : index
    %c0_10 = arith.constant 0 : index
    %c0_11 = arith.constant 0 : index
    %9 = vector.load %arg5[%c0_9, %c0_10, %c0_11] : memref<2x4x16xf32, #tpu.memory_space<vmem>>, vector<1x4x16xf32>
    %10 = vector.shape_cast %9 : vector<1x4x16xf32> to vector<4x16xf32>
    %11 = vector.shape_cast %8 : vector<4x16xf32> to vector<1x4x16xf32>
    tpu.vector_store %arg5[%c0_9, %c0_10, %c0_11], %11 {strides = array<i32>} : memref<2x4x16xf32, #tpu.memory_space<vmem>>, vector<1x4x16xf32>,
    %c1 = arith.constant 1 : index
    %c0_12 = arith.constant 0 : index
    %c0_13 = arith.constant 0 : index
    %12 = vector.load %arg1[%c1, %c0_12, %c0_13] : memref<2x16x256xf32, #tpu.memory_space<vmem>>, vector<1x16x256xf32>
    %13 = vector.shape_cast %12 : vector<1x16x256xf32> to vector<16x256xf32>
    %cst_14 = arith.constant dense<0.000000e+00> : vector<4x256xf32>
    %14 = tpu.matmul %0, %13, %cst_14 {dimension_numbers = #tpu.dot_dimension_numbers<[1], [0], [0], [1], [0, 0, 1, 1], [], []>} : vector<4x16xf32>, vector<16x256xf32>, vector<4x256xf32> -> vector<4x256xf32>
    %cst_15 = arith.constant dense<0.000000e+00> : vector<4x16xf32>
    %15 = tpu.matmul %14, %1, %cst_15 {dimension_numbers = #tpu.dot_dimension_numbers<[1], [0], [0], [1], [0, 0, 1, 1], [], []>} : vector<4x256xf32>, vector<256x16xf32>, vector<4x16xf32> -> vector<4x16xf32>
    %16 = vector.broadcast %2 : vector<4x1xf32> to vector<4x16xf32>
    %17 = arith.addf %15, %16 : vector<4x16xf32>
    %c1_16 = arith.constant 1 : index
    %c0_17 = arith.constant 0 : index
    %c0_18 = arith.constant 0 : index
    %18 = vector.load %arg5[%c1_16, %c0_17, %c0_18] : memref<2x4x16xf32, #tpu.memory_space<vmem>>, vector<1x4x16xf32>
    %19 = vector.shape_cast %18 : vector<1x4x16xf32> to vector<4x16xf32>
    %20 = vector.shape_cast %17 : vector<4x16xf32> to vector<1x4x16xf32>
    tpu.vector_store %arg5[%c1_16, %c0_17, %c0_18], %20 {strides = array<i32>} : memref<2x4x16xf32, #tpu.memory_space<vmem>>, vector<1x4x16xf32>,
    return
  }
  func.func @transform_0(%arg0: i32) -> (i32, i32, i32) {
    %c0_i32 = arith.constant 0 : i32
    %c0_i32_0 = arith.constant 0 : i32
    %c0_i32_1 = arith.constant 0 : i32
    %c0_i32_2 = arith.constant 0 : i32
    return %c0_i32, %c0_i32_0, %c0_i32_1 : i32, i32, i32
  }
  func.func @transform_1(%arg0: i32) -> (i32, i32) {
    %c0_i32 = arith.constant 0 : i32
    %c0_i32_0 = arith.constant 0 : i32
    %c0_i32_1 = arith.constant 0 : i32
    return %c0_i32, %c0_i32_0 : i32, i32
  }
  func.func @transform_2(%arg0: i32) -> (i32, i32) {
    %c0_i32 = arith.constant 0 : i32
    %c0_i32_0 = arith.constant 0 : i32
    %c0_i32_1 = arith.constant 0 : i32
    return %c0_i32, %c0_i32_0 : i32, i32
  }
  func.func @transform_3(%arg0: i32) -> (i32, i32) {
    %c0_i32 = arith.constant 0 : i32
    %c0_i32_0 = arith.constant 0 : i32
    %c0_i32_1 = arith.constant 0 : i32
    return %c0_i32, %c0_i32_0 : i32, i32
  }
  func.func @transform_4(%arg0: i32) -> (i32, i32, i32) {
    %c0_i32 = arith.constant 0 : i32
    %c0_i32_0 = arith.constant 0 : i32
    %c0_i32_1 = arith.constant 0 : i32
    %c0_i32_2 = arith.constant 0 : i32
    return %c0_i32, %c0_i32_0, %c0_i32_1 : i32, i32, i32
  }
}

</mosaic_0001>

<bundles_post_ra>
// kernel: concentration_pipeline.1
= control target key start
LH: loop header
LB: loop body
LE: loop exit
PB: predicated region body
PF: predicated region fallthrough
CT: control target
= control target key end

     0   :  { %v511_v3 = vmov 0.0   ;;  %vm55_vm0 = vcmask 130048   ;;  %v512_v62 = vmov 0   ;;  %vm205_vm1 = vcmask 125952   ;;  %s670_s0 = inlined_call_operand.vmem [shape: f32[2,16,256], index: 0, kind: input, shape index: {}]   ;;  %s671_s1 = inlined_call_operand.vmem [shape: f32[4,16], index: 1, kind: input, shape index: {}]   ;;  %s672_s3 = inlined_call_operand.vmem [shape: f32[256,16], index: 3, kind: input, shape index: {}]   ;;  %s673_s2 = inlined_call_operand.vmem [shape: f32[4,1], index: 2, kind: input, shape index: {}]   ;;  %s674_s4 = inlined_call_operand.vmem [shape: f32[2,4,16], index: 4, kind: output, shape index: {}]  }
   0x1   :  { %v52_v0 = vld [vmem:[%s670_s0 + $0x8] sm:$0xff]  ;;  %v54_v1 = vld [vmem:[%s670_s0 + $0x18] sm:$0xff]  ;;  %123 = vmatprep.mubr.f32.mxu1 %v511_v3  ;;  %276 = vmatprep.mubr.f32.mxu0 %v511_v3  ;;  %v51_v6 = vld [vmem:[%s670_s0] sm:$0xff] }
   0x2   :  { %v361_v2 = vld [vmem:[%s670_s0 + $0x28] sm:$0xff]  ;;  %v436_v4 = vpack.c.bf16 %v54_v1, %v52_v0  ;;  %v363_v5 = vld [vmem:[%s670_s0 + $0x38] sm:$0xff]  ;;  %v53_v7 = vld [vmem:[%s670_s0 + $0x10] sm:$0xff]  ;;  %510 = vset.pattern.permute.xlu0 %v512_v62 }
   0x3   :  { %v472_v8 = vpack.c.bf16 %v363_v5, %v361_v2  ;;  %v438_v9 = vpack.c.bf16 %v53_v7, %v51_v6  ;;  %v360_v10 = vld [vmem:[%s670_s0 + $0x20] sm:$0xff]  ;;  %v362_v11 = vld [vmem:[%s670_s0 + $0x30] sm:$0xff]  ;;  %v35_v15 = vld [vmem:[%s672_s3 + $0x88] sm:$0xff] }
   0x4   :  { %v17_v12 = vld [vmem:[%s671_s1] sm:$0xf]  ;;  %437 = vmatprep.subr.bf16.mxu1 %v436_v4  ;;  %v474_v13 = vpack.c.bf16 %v362_v11, %v360_v10  ;;  %v19_v18 = vld [vmem:[%s672_s3 + $0x8] sm:$0xff]  ;;  %v36_v19 = vld [vmem:[%s672_s3 + $0x90] sm:$0xff] }
   0x5   :  { %v34_v14 = vld [vmem:[%s672_s3 + $0x80] sm:$0xff]  ;;  %473 = vmatprep.subr.bf16.mxu0 %v472_v8  ;;  %439 = vmatpush1.bf16.msra.mxu1 %v438_v9  ;;  %v37_v20 = vld [vmem:[%s672_s3 + $0x98] sm:$0xff]  ;;  %v20_v23 = vld [vmem:[%s672_s3 + $0x10] sm:$0xff] }
   0x6   :  { %v18_v16 = vld [vmem:[%s672_s3] sm:$0xff]  ;;  %v440_v17 = vpack.c.bf16 %v35_v15, %v34_v14  ;;  %475 = vmatpush1.bf16.msra.mxu0 %v474_v13  ;;  %v444_v22 = vpack.c.bf16 %v37_v20, %v36_v19  ;;  %v21_v24 = vld [vmem:[%s672_s3 + $0x18] sm:$0xff]  ;;  %v39_v26 = vld [vmem:[%s672_s3 + $0xa8] sm:$0xff] }
   0x7   :  { %v442_v21 = vpack.c.bf16 %v19_v18, %v18_v16  ;;  %v38_v25 = vld [vmem:[%s672_s3 + $0xa0] sm:$0xff]  ;;  %v446_v27 = vpack.c.bf16 %v21_v24, %v20_v23  ;;  %v23_v30 = vld [vmem:[%s672_s3 + $0x28] sm:$0xff]  ;;  %v40_v31 = vld [vmem:[%s672_s3 + $0xb0] sm:$0xff] }
   0x8   :  { %441 = vmatprep.subr.bf16.mxu1 %v440_v17  ;;  %477 = vmatprep.subr.bf16.mxu0 %v440_v17  ;;  %v448_v28 = vpack.c.bf16 %v39_v26, %v38_v25  ;;  %v22_v29 = vld [vmem:[%s672_s3 + $0x20] sm:$0xff]  ;;  %v41_v32 = vld [vmem:[%s672_s3 + $0xb8] sm:$0xff]  ;;  %v24_v35 = vld [vmem:[%s672_s3 + $0x30] sm:$0xff] }
   0x9   :  { %359 = vmatmul.mubr.msk.f32.vlgmr.msra.gmra.mrb[0].mxu1 %vm55_vm0, %v17_v12  ;;  %364 = vmatmul.mubr.msk.f32.vlgmr.msra.gmra.mrb[0].mxu0 %vm55_vm0, %v17_v12  ;;  %v450_v33 = vpack.c.bf16 %v23_v30, %v22_v29  ;;  %v452_v34 = vpack.c.bf16 %v41_v32, %v40_v31  ;;  %v25_v36 = vld [vmem:[%s672_s3 + $0x38] sm:$0xff]  ;;  %v42_v37 = vld [vmem:[%s672_s3 + $0xc0] sm:$0xff]  ;;  %v43_v38 = vld [vmem:[%s672_s3 + $0xc8] sm:$0xff] }
   0xa   :  { %443 = vmatpush3.bf16.msra.mxu1 %v442_v21  ;;  %479 = vmatpush3.bf16.msra.mxu0 %v442_v21  ;;  %v454_v39 = vpack.c.bf16 %v25_v36, %v24_v35  ;;  %v456_v40 = vpack.c.bf16 %v43_v38, %v42_v37  ;;  %v26_v41 = vld [vmem:[%s672_s3 + $0x40] sm:$0xff]  ;;  %v27_v42 = vld [vmem:[%s672_s3 + $0x48] sm:$0xff]  ;;  %v44_v43 = vld [vmem:[%s672_s3 + $0xd0] sm:$0xff] }
   0xb   :  { %445 = vmatprep.subr.bf16.mxu1 %v444_v22  ;;  %481 = vmatprep.subr.bf16.mxu0 %v444_v22  ;;  %v45_v44 = vld [vmem:[%s672_s3 + $0xd8] sm:$0xff]  ;;  %v458_v45 = vpack.c.bf16 %v27_v42, %v26_v41  ;;  %v28_v47 = vld [vmem:[%s672_s3 + $0x50] sm:$0xff]  ;;  %v46_v49 = vld [vmem:[%s672_s3 + $0xe0] sm:$0xff] }
   0xc   :  { %v460_v46 = vpack.c.bf16 %v45_v44, %v44_v43  ;;  %v29_v48 = vld [vmem:[%s672_s3 + $0x58] sm:$0xff]  ;;  %v47_v50 = vld [vmem:[%s672_s3 + $0xe8] sm:$0xff]  ;;  %v30_v53 = vld [vmem:[%s672_s3 + $0x60] sm:$0xff] }
   0xd   :  { %v462_v51 = vpack.c.bf16 %v29_v48, %v28_v47  ;;  %v464_v52 = vpack.c.bf16 %v47_v50, %v46_v49  ;;  %v31_v54 = vld [vmem:[%s672_s3 + $0x68] sm:$0xff]  ;;  %v48_v55 = vld [vmem:[%s672_s3 + $0xf0] sm:$0xff]  ;;  %v49_v56 = vld [vmem:[%s672_s3 + $0xf8] sm:$0xff] }
   0xe   :  { %447 = vmatpush3.bf16.msra.mxu1 %v446_v27  ;;  %483 = vmatpush3.bf16.msra.mxu0 %v446_v27  ;;  %v466_v57 = vpack.c.bf16 %v31_v54, %v30_v53  ;;  %v468_v58 = vpack.c.bf16 %v49_v56, %v48_v55  ;;  %v32_v59 = vld [vmem:[%s672_s3 + $0x70] sm:$0xff]  ;;  %v33_v60 = vld [vmem:[%s672_s3 + $0x78] sm:$0xff]  ;;  %v50_v63 = vld [vmem:[%s673_s2] sm:$0xf] }
   0xf   :  { %449 = vmatprep.subr.bf16.mxu1 %v448_v28  ;;  %485 = vmatprep.subr.bf16.mxu0 %v448_v28  ;;  %v470_v61 = vpack.c.bf16 %v33_v60, %v32_v59 }
  0x10   :  { %132 = vperm.xlu0 %510, %v50_v63  }
  0x12   :  { %451 = vmatpush3.bf16.msra.mxu1 %v450_v33  ;;  %487 = vmatpush3.bf16.msra.mxu0 %v450_v33 }
  0x13   :  { %453 = vmatprep.subr.bf16.mxu1 %v452_v34  ;;  %489 = vmatprep.subr.bf16.mxu0 %v452_v34 }
  0x16   :  { %455 = vmatpush3.bf16.msra.mxu1 %v454_v39  ;;  %491 = vmatpush3.bf16.msra.mxu0 %v454_v39 }
  0x17   :  { %457 = vmatprep.subr.bf16.mxu1 %v456_v40  ;;  %493 = vmatprep.subr.bf16.mxu0 %v456_v40 }
  0x1a   :  { %459 = vmatpush3.bf16.msra.mxu1 %v458_v45  ;;  %495 = vmatpush3.bf16.msra.mxu0 %v458_v45 }
  0x1b   :  { %461 = vmatprep.subr.bf16.mxu1 %v460_v46  ;;  %497 = vmatprep.subr.bf16.mxu0 %v460_v46 }
  0x1e   :  { %463 = vmatpush3.bf16.msra.mxu1 %v462_v51  ;;  %499 = vmatpush3.bf16.msra.mxu0 %v462_v51 }
  0x1f   :  { %465 = vmatprep.subr.bf16.mxu1 %v464_v52  ;;  %501 = vmatprep.subr.bf16.mxu0 %v464_v52 }
  0x22   :  { %467 = vmatpush3.bf16.msra.mxu1 %v466_v57  ;;  %503 = vmatpush3.bf16.msra.mxu0 %v466_v57 }
  0x23   :  { %469 = vmatprep.subr.bf16.mxu1 %v468_v58  ;;  %505 = vmatprep.subr.bf16.mxu0 %v468_v58 }
  0x26   :  { %471 = vmatpush3.bf16.msra.mxu1 %v470_v61  ;;  %507 = vmatpush3.bf16.msra.mxu0 %v470_v61 }
  0x8f   :  { %v133_v5 = vpop.permute.xlu0 %132 }
  0xdc   :  { %v125_v0 = vpop.f32.mrb[0].mxu1  ;;  %v278_v1 = vpop.f32.mrb[0].mxu0 }
  0xdd   :  { %v127_v2 = vpop.f32.mrb[1].mxu1  ;;  %v280_v3 = vpop.f32.mrb[1].mxu0 }
  0xde   :  { %199 = vmatprep.mubr.f32.mxu1 %v127_v2  ;;  %347 = vmatprep.mubr.f32.mxu0 %v280_v3 }
  0xdf   :  { %200 = vmatmul.mubr.f32.vlgmr.msra.gmra.mrb[2].mxu1 %v125_v0  ;;  %348 = vmatmul.mubr.f32.vlgmr.msra.gmra.mrb[2].mxu0 %v278_v1 }
 0x1b2   :  { %v398_v4 = vpop.f32.mrb[2].mxu1  ;;  %v433_v6 = vpop.f32.mrb[2].mxu0 }
 0x1b3   :  { %v399_v7 = vpop.f32.mrb[3].mxu1  ;;  %v434_v9 = vpop.f32.mrb[3].mxu0 }
 0x1b4   :  { %v400_v8 = vadd.f32 %v399_v7, %v398_v4  ;;  %v435_v10 = vadd.f32 %v434_v9, %v433_v6 }
 0x1b6   :  { %v202_v11 = vadd.f32 %v400_v8, %v133_v5  ;;  %v350_v12 = vadd.f32 %v435_v10, %v133_v5 }
 0x1b8   :  { %206 = vst.msk [vmem:[%s674_s4] sm:$0xf] %vm205_vm1, %v202_v11  ;;  %365 = vst.msk [vmem:[%s674_s4 + $0x4] sm:$0xf] %vm205_vm1, %v350_v12 }

</bundles_post_ra>
